<compile_context>
chip_gen: v7x
topology: tpu7x:2x2x1
jax: 0.10.0
libtpu: 0.0.40
codegen_flags: <defaults>
</compile_context>

<pallas_src>
import functools

import jax
import jax.numpy as jnp
from jax.experimental import pallas as pl
from jax.experimental.pallas import tpu as pltpu

LANES = 128
SUBLANES = 8


def _focal_loss_kernel(x_ref, t_ref, o_ref, *, gamma, int_gamma, share_exp,
                       tail_valid, last_block, approx_recip):
    x = x_ref[...].astype(jnp.float32)
    t = t_ref[...].astype(jnp.float32)
    tb, lanes = x.shape

    # Stable BCE-with-logits:
    #   x - x*t + max(-x,0) + log(exp(-max)+exp(-x-max))
    #   == max(x,0) - x*t + log1p(exp(-|x|))
    xt = x * t                                                  # reused below
    e_abs = jnp.exp(-jnp.abs(x))                                # EUP exp
    l1p_abs = jnp.log1p(e_abs)                                  # EUP log1p
    bce = jnp.maximum(x, 0.0) - xt + l1p_abs

    if int_gamma == 0:
        # gamma == 0: focal factor is exactly 1.
        loss = bce
    else:
        z = x - 2.0 * xt                                        # == -x*(2t-1)
        if share_exp:
            # For binary targets |z| == |x|: reuse both EUP results.
            e_z, l1p_z = e_abs, l1p_abs
        else:
            e_z = jnp.exp(-jnp.abs(z))                          # EUP exp
            l1p_z = None

        if int_gamma is not None:
            # focal factor = sigmoid(z)^gamma  (stable sigmoid; pow by
            # exponentiation-by-squaring -> pure VPU multiplies).
            one_p = 1.0 + e_z
            if approx_recip:
                inv = pl.reciprocal(one_p, approx=True)         # EUP recip
            else:
                inv = 1.0 / one_p
            sig = jnp.where(z >= 0.0, 1.0, e_z) * inv
            factor, base, g = None, sig, int_gamma
            while g:
                if g & 1:
                    factor = base if factor is None else factor * base
                g >>= 1
                if g:
                    base = base * base
        else:
            # general gamma: exp(gamma * logsigmoid(z))
            if l1p_z is None:
                l1p_z = jnp.log1p(e_z)                          # EUP log1p
            invprobs = jnp.minimum(z, 0.0) - l1p_z
            factor = jnp.exp(gamma * invprobs)                  # EUP exp
        loss = factor * bce

    def _partial(v):
        # Vreg-shaped (8, 128) partial sum: tile-aligned reshape, VPU adds
        # only (no XLU cross-lane reduce, no serial scalar dependency).
        return v.reshape(tb // SUBLANES, SUBLANES, lanes).sum(axis=0)

    if tail_valid is None:
        # Element count is block-aligned: mask-free path on every block.
        o_ref[...] = _partial(loss)
    else:
        i = pl.program_id(0)

        @pl.when(i != last_block)
        def _():
            o_ref[...] = _partial(loss)

        @pl.when(i == last_block)
        def _():
            # Mask padded / out-of-bounds tail.  Block-local linear index
            # (fits int32 for any tensor size); OOB boundary-block data is
            # discarded by the select, so garbage reads are harmless.
            row = jax.lax.broadcasted_iota(jnp.int32, (tb, lanes), 0)
            lane = jax.lax.broadcasted_iota(jnp.int32, (tb, lanes), 1)
            lin = row * lanes + lane
            o_ref[...] = _partial(jnp.where(lin < tail_valid, loss, 0.0))


def _sublane_align(dtype):
    itemsize = jnp.dtype(dtype).itemsize
    return SUBLANES * max(1, 4 // max(itemsize, 1))


def focal_loss3(inputs, target, gamma, *, block_rows=2048,
                assume_binary_targets=False, approx_recip=False):
    """Equivalent of FocalLoss3(gamma)(inputs, target). Returns a scalar f32.

    assume_binary_targets: share exp(-|x|) between the BCE and focal terms;
      ONLY valid when every target is exactly 0 or 1 (auto-enabled for bool
      targets).  Wrong results for soft / smoothed labels.
    approx_recip: use the EUP approximate reciprocal in the integer-gamma
      sigmoid (tiny accuracy change; off by default).
    """
    if inputs.shape != target.shape:
        raise ValueError(
            "Target size ({}) must be the same as input size ({})".format(
                target.shape, inputs.shape))

    n_elems = int(inputs.size)

    x_flat = inputs.reshape(-1)
    t_flat = target.reshape(-1)

    share_exp = bool(assume_binary_targets)
    if t_flat.dtype == jnp.bool_:
        # Same byte-width, Pallas-friendly, and provably binary.
        t_flat = t_flat.astype(jnp.int8)
        share_exp = True

    sub = max(_sublane_align(x_flat.dtype), _sublane_align(t_flat.dtype))
    pad_to = sub * LANES
    padded = ((n_elems + pad_to - 1) // pad_to) * pad_to
    if padded != n_elems:
        # Only hit when the element count is not (sublane*lane)-aligned; the
        # pad region is masked out in-kernel (last block only).
        x_flat = jnp.pad(x_flat, (0, padded - n_elems))
        t_flat = jnp.pad(t_flat, (0, padded - n_elems))

    rows = padded // LANES
    x2 = x_flat.reshape(rows, LANES)
    t2 = t_flat.reshape(rows, LANES)

    # Large row blocks, block rows kept a multiple of the strictest sublane
    # alignment of the two streams (8 f32 / 16 bf16 / 32 int8).
    tb = min(block_rows, rows)
    tb = max(sub, (tb // sub) * sub)
    num_blocks = (rows + tb - 1) // tb

    # Ragged / padded tail: valid element count inside the LAST block only
    # (<= tb*128, so plain int32 math in the kernel — no overflow for huge N).
    if n_elems == num_blocks * tb * LANES:
        tail_valid = None                      # block-aligned: never mask
    else:
        tail_valid = n_elems - (num_blocks - 1) * tb * LANES

    g = float(gamma)
    int_gamma = int(g) if (g.is_integer() and 0.0 <= g <= 8.0) else None

    kernel = functools.partial(
        _focal_loss_kernel,
        gamma=g,
        int_gamma=int_gamma,
        share_exp=share_exp,
        tail_valid=tail_valid,
        last_block=num_blocks - 1,
        approx_recip=bool(approx_recip),
    )

    # Explicit scoped-VMEM budget: double-buffered inputs + f32 elementwise
    # temporaries + headroom; clamped to stay inside v7x's 64 MiB physical.
    x_bytes = tb * LANES * x2.dtype.itemsize
    t_bytes = tb * LANES * t2.dtype.itemsize
    tmp_bytes = 12 * tb * LANES * 4
    vmem_limit = min(max(2 * (x_bytes + t_bytes) + tmp_bytes + (2 << 20),
                         16 << 20), 64 << 20)

    partials = pl.pallas_call(
        kernel,
        out_shape=jax.ShapeDtypeStruct((num_blocks * SUBLANES, LANES),
                                       jnp.float32),
        grid_spec=pltpu.PrefetchScalarGridSpec(
            num_scalar_prefetch=0,
            grid=(num_blocks,),
            in_specs=[
                pl.BlockSpec((tb, LANES), lambda i: (i, 0)),
                pl.BlockSpec((tb, LANES), lambda i: (i, 0)),
            ],
            out_specs=pl.BlockSpec((SUBLANES, LANES), lambda i: (i, 0)),
        ),
        # Independent blocks -> "parallel" so megacore (v7x) can shard them.
        compiler_params=pltpu.CompilerParams(
            dimension_semantics=("parallel",),
            vmem_limit_bytes=int(vmem_limit)),
    )(x2, t2)

    return jnp.sum(partials) / jnp.float32(n_elems)


def _reference_focal_loss3(inputs, target, gamma):
    x = inputs.astype(jnp.float32)
    t = target.astype(jnp.float32)
    max_val = jnp.maximum(-x, 0.0)
    loss = x - x * t + max_val + jnp.log(
        jnp.exp(-max_val) + jnp.exp(-x - max_val))
    invprobs = jax.nn.log_sigmoid(-x * (t * 2.0 - 1.0))
    loss = jnp.exp(invprobs * gamma) * loss
    return jnp.mean(loss)


if __name__ == "__main__":
    key = jax.random.PRNGKey(0)
    k1, k2, k3, k4 = jax.random.split(key, 4)

    # Segmentation-style loss: NCHW logits / binary targets.
    shape = (2, 4, 16, 16)
    gamma = 2.0

    logits = jax.random.normal(k1, shape, dtype=jnp.float32) * 2.0
    target = (jax.random.uniform(k2, shape) > 0.5).astype(jnp.float32)

    out = jax.block_until_ready(focal_loss3(logits, target, gamma))
    ref = _reference_focal_loss3(logits, target, gamma)
    assert jnp.allclose(out, ref, rtol=1e-5, atol=1e-5), (out, ref)

    # Non-integer gamma (general EUP path), non-aligned size (pad + masked
    # last block), and a tiny block_rows to force multiple grid blocks.
    shape2 = (2, 3, 15, 17)
    logits2 = jax.random.normal(k3, shape2, dtype=jnp.float32) * 2.0
    target2 = (jax.random.uniform(k4, shape2) > 0.5).astype(jnp.float32)
    out2 = jax.block_until_ready(
        focal_loss3(logits2, target2, 1.7, block_rows=8))
    ref2 = _reference_focal_loss3(logits2, target2, 1.7)
    assert jnp.allclose(out2, ref2, rtol=1e-5, atol=1e-5), (out2, ref2)

    # Binary-target fast path with explicit flag (shares the EUP results).
    out3 = jax.block_until_ready(
        focal_loss3(logits, target, gamma, assume_binary_targets=True))
    assert jnp.allclose(out3, ref, rtol=1e-5, atol=1e-5), (out3, ref)

    # Narrow (bool) target stream: int8 on the wire, cast inside the kernel.
    target_bool = jax.random.uniform(k2, shape) > 0.5
    out4 = jax.block_until_ready(focal_loss3(logits, target_bool, gamma))
    assert jnp.allclose(out4, ref, rtol=1e-5, atol=1e-5), (out4, ref)

    # Approximate-reciprocal sigmoid (optional; looser tolerance).
    out5 = jax.block_until_ready(
        focal_loss3(logits, target, gamma, approx_recip=True))
    assert jnp.allclose(out5, ref, rtol=1e-2, atol=1e-2), (out5, ref)

    print("KERNEL_OK")
</pallas_src>

<mosaic_0001>
module attributes {stable_mosaic.version = 11 : i64} {
  func.func @_focal_loss_kernel(%arg0: i32, %arg1: memref<16x128xf32, #tpu.memory_space<vmem>>, %arg2: memref<16x128xf32, #tpu.memory_space<vmem>>, %arg3: memref<8x128xf32, #tpu.memory_space<vmem>>) attributes {dimension_semantics = [#tpu.dimension_semantics<parallel>], iteration_bounds = array<i64: 1>, scalar_prefetch = 0 : i64, scratch_operands = 0 : i64, tpu.core_type = #tpu.core_type<tc>, window_params = [{transform_indices = @transform_0, window_bounds = array<i64: 16, 128>}, {transform_indices = @transform_1, window_bounds = array<i64: 16, 128>}, {transform_indices = @transform_2, window_bounds = array<i64: 8, 128>}]} {
    %c0 = arith.constant 0 : index
    %c0_0 = arith.constant 0 : index
    %0 = vector.load %arg1[%c0, %c0_0] : memref<16x128xf32, #tpu.memory_space<vmem>>, vector<16x128xf32>
    %c0_1 = arith.constant 0 : index
    %c0_2 = arith.constant 0 : index
    %1 = vector.load %arg2[%c0_1, %c0_2] : memref<16x128xf32, #tpu.memory_space<vmem>>, vector<16x128xf32>
    %2 = arith.mulf %0, %1 : vector<16x128xf32>
    %3 = math.absf %0 : vector<16x128xf32>
    %cst = arith.constant 0.000000e+00 : f32
    %4 = vector.broadcast %cst : f32 to vector<16x128xf32>
    %5 = arith.subf %4, %3 : vector<16x128xf32>
    %6 = math.exp %5 : vector<16x128xf32>
    %7 = math.log1p %6 : vector<16x128xf32>
    %cst_3 = arith.constant 0.000000e+00 : f32
    %8 = vector.broadcast %cst_3 : f32 to vector<16x128xf32>
    %9 = arith.maximumf %0, %8 : vector<16x128xf32>
    %10 = arith.subf %9, %2 : vector<16x128xf32>
    %11 = arith.addf %10, %7 : vector<16x128xf32>
    %cst_4 = arith.constant 2.000000e+00 : f32
    %12 = vector.broadcast %cst_4 : f32 to vector<16x128xf32>
    %13 = arith.mulf %12, %2 : vector<16x128xf32>
    %14 = arith.subf %0, %13 : vector<16x128xf32>
    %15 = math.absf %14 : vector<16x128xf32>
    %cst_5 = arith.constant 0.000000e+00 : f32
    %16 = vector.broadcast %cst_5 : f32 to vector<16x128xf32>
    %17 = arith.subf %16, %15 : vector<16x128xf32>
    %18 = math.exp %17 : vector<16x128xf32>
    %cst_6 = arith.constant 1.000000e+00 : f32
    %19 = vector.broadcast %cst_6 : f32 to vector<16x128xf32>
    %20 = arith.addf %19, %18 : vector<16x128xf32>
    %cst_7 = arith.constant 1.000000e+00 : f32
    %21 = vector.broadcast %cst_7 : f32 to vector<16x128xf32>
    %22 = arith.divf %21, %20 : vector<16x128xf32>
    %cst_8 = arith.constant 0.000000e+00 : f32
    %23 = vector.broadcast %cst_8 : f32 to vector<16x128xf32>
    %24 = arith.cmpf oge, %14, %23 : vector<16x128xf32>
    %cst_9 = arith.constant 1.000000e+00 : f32
    %25 = vector.broadcast %cst_9 : f32 to vector<16x128xf32>
    %26 = arith.select %24, %25, %18 : vector<16x128xi1>, vector<16x128xf32>
    %27 = arith.mulf %26, %22 : vector<16x128xf32>
    %28 = arith.mulf %27, %27 : vector<16x128xf32>
    %29 = arith.mulf %28, %11 : vector<16x128xf32>
    %30 = vector.shape_cast %29 : vector<16x128xf32> to vector<2x8x128xf32>
    %cst_10 = arith.constant dense<0.000000e+00> : vector<8x128xf32>
    %31 = vector.multi_reduction <add>, %30, %cst_10 [0] : vector<2x8x128xf32> to vector<8x128xf32>
    %c0_11 = arith.constant 0 : index
    %c0_12 = arith.constant 0 : index
    %32 = vector.load %arg3[%c0_11, %c0_12] : memref<8x128xf32, #tpu.memory_space<vmem>>, vector<8x128xf32>
    tpu.vector_store %arg3[%c0_11, %c0_12], %31 {strides = array<i32>} : memref<8x128xf32, #tpu.memory_space<vmem>>, vector<8x128xf32>,
    return
  }
  func.func @transform_0(%arg0: i32) -> (i32, i32) {
    %c0_i32 = arith.constant 0 : i32
    %c0_i32_0 = arith.constant 0 : i32
    return %arg0, %c0_i32 : i32, i32
  }
  func.func @transform_1(%arg0: i32) -> (i32, i32) {
    %c0_i32 = arith.constant 0 : i32
    %c0_i32_0 = arith.constant 0 : i32
    return %arg0, %c0_i32 : i32, i32
  }
  func.func @transform_2(%arg0: i32) -> (i32, i32) {
    %c0_i32 = arith.constant 0 : i32
    %c0_i32_0 = arith.constant 0 : i32
    return %arg0, %c0_i32 : i32, i32
  }
}

</mosaic_0001>

<bundles_post_ra>
// kernel: tpu_custom_call.1
= control target key start
LH: loop header
LB: loop body
LE: loop exit
PB: predicated region body
PF: predicated region fallthrough
CT: control target
= control target key end

     0   :  { %7 = vsyncpa [#allocation3], 0  ;;  %s273_s0 = inlined_call_operand.hbm [shape: f32[16,128], index: 0, kind: input, shape index: {}]   ;;  %s274_s1 = inlined_call_operand.hbm [shape: f32[16,128], index: 1, kind: input, shape index: {}]   ;;  %s275_s2 = inlined_call_operand.hbm [shape: f32[8,128], index: 2, kind: output, shape index: {}]  }
   0x1   :  { %8 = vsyncpa [#allocation6], 0 }
   0x2   :  { %9 = vsyncpa [#allocation4], 0  ;;  %s217_s9 = smov [#allocation2]   ;;  %s145_s13 = scalar_lea.hbm %s273_s0, 256 }
   0x3   :  { %s15_s10 = sshll.u32 %s217_s9, 4  ;;  %p146_p0 = scmp.ne.s32.totalorder %s273_s0, %s145_s13  ;;  %s16_s10 = int_to_ptr.vmem [resolvable:$true] %s15_s10 }
   0x4   :  { %p149_p1 = scmp.lt.u32.totalorder %s145_s13, %s273_s0 }
   0x6   :  { %p151_p2 = pnand %p149_p1, %p146_p0 }
   0x8   :  { %154 = shalt.err (!%p151_p2)
}
   0x9   :  { %s155_s18 = scalar_lea.vmem %s16_s10, 256  ;;  %p160_p4 = scmp.lt.s32.totalorder %s16_s10, %s16_s10 }
   0xa   :  { %p156_p3 = scmp.ne.s32.totalorder %s16_s10, %s155_s18  ;;  %p161_p5 = scmp.lt.s32.totalorder %s155_s18, %s155_s18 }
   0xc   :  { %p162_p6 = por %p161_p5, %p160_p4 }
   0xe   :  { %p163_p7 = pnand %p162_p6, %p156_p3 }
  0x10   :  { %166 = shalt.err (!%p163_p7)
}
  0x11   :  { %s218_s19 = smov 128   ;;  %s219_s20 = smov 8  }
  0x12   :  { %21 = dma.hbm_to_vmem [thread:$0]  %s273_s0, 256, %s16_s10, [#allocation3], %s218_s19, %s218_s19, %s219_s20  }
  0x13   :  { %s220_s23 = smov [#allocation5]   ;;  %s167_s27 = scalar_lea.hbm %s274_s1, 256 }
  0x14   :  { %s27_s24 = sshll.u32 %s220_s23, 4  ;;  %p168_p8 = scmp.ne.s32.totalorder %s274_s1, %s167_s27  ;;  %s28_s24 = int_to_ptr.vmem [resolvable:$true] %s27_s24 }
  0x15   :  { %p171_p9 = scmp.lt.u32.totalorder %s167_s27, %s274_s1 }
  0x17   :  { %p173_p10 = pnand %p171_p9, %p168_p8 }
  0x19   :  { %176 = shalt.err (!%p173_p10)
}
  0x1a   :  { %s177_s4 = scalar_lea.vmem %s28_s24, 256  ;;  %p182_p12 = scmp.lt.s32.totalorder %s28_s24, %s28_s24 }
  0x1b   :  { %p178_p11 = scmp.ne.s32.totalorder %s28_s24, %s177_s4  ;;  %p183_p13 = scmp.lt.s32.totalorder %s177_s4, %s177_s4 }
  0x1d   :  { %p184_p0 = por %p183_p13, %p182_p12 }
  0x1f   :  { %p185_p1 = pnand %p184_p0, %p178_p11 }
  0x21   :  { %188 = shalt.err (!%p185_p1)
}
  0x22   :  { %33 = dma.hbm_to_vmem [thread:$0]  %s274_s1, 256, %s28_s24, [#allocation6], %s218_s19, %s218_s19, %s219_s20  }
  0x23   :  { %211 = dma.done.wait [#allocation3], 256  }
  0x24   :  { %212 = vsyncadd [#allocation3], 4294967040 }
  0x25   :  { %213 = dma.done.wait [#allocation6], 256  }
  0x26   :  { %214 = vsyncadd [#allocation6], 4294967040  ;;  %v40_v0 = vld [vmem:[#allocation2] sm:$0xff]  ;;  %v41_v1 = vld [vmem:[#allocation2 + $0x8] sm:$0xff]  ;;  %s221_s1 = smov [#allocation7]  }
  0x27   :  { %v42_v2 = vld [vmem:[#allocation5] sm:$0xff]  ;;  %v43_v3 = vld [vmem:[#allocation5 + $0x8] sm:$0xff]  ;;  %v46_v5 = vand.u32 2147483647, %v40_v0  ;;  %v47_v6 = vand.u32 2147483647, %v41_v1 }
  0x28   :  { %v44_v4 = vmul.f32 %v42_v2, %v40_v0  ;;  %v45_v7 = vmul.f32 %v43_v3, %v41_v1  ;;  %v72_v36 = vmax.f32 %v40_v0, 0.0  ;;  %v73_v39 = vmax.f32 %v41_v1, 0.0  ;;  %s114_s6 = sshll.u32 %s221_s1, 4  ;;  %s115_s6 = int_to_ptr.vmem [resolvable:$true] %s114_s6 }
  0x29   :  { %v48_v8 = vsub.f32 0.0, %v46_v5  ;;  %v49_v9 = vsub.f32 0.0, %v47_v6  ;;  %s189_s7 = scalar_lea.vmem %s115_s6, 128  ;;  %p194_p3 = scmp.lt.s32.totalorder %s115_s6, %s115_s6 }
  0x2a   :  { %v78_v10 = vmul.f32 2.0, %v44_v4  ;;  %v79_v11 = vmul.f32 2.0, %v45_v7  ;;  %v74_v44 = vsub.f32 %v72_v36, %v44_v4  ;;  %v75_v46 = vsub.f32 %v73_v39, %v45_v7  ;;  %p190_p2 = scmp.ne.s32.totalorder %s115_s6, %s189_s7  ;;  %p195_p4 = scmp.lt.s32.totalorder %s189_s7, %s189_s7 }
  0x2b   :  { %v50_v12 = vmul.f32 1.442695, %v48_v8  ;;  %v52_v13 = vmul.f32 1.442695, %v49_v9 }
  0x2c   :  { %v80_v14 = vsub.f32 %v40_v0, %v78_v10  ;;  %v81_v15 = vsub.f32 %v41_v1, %v79_v11  ;;  %p196_p5 = por %p195_p4, %p194_p3 }
  0x2d   :  { %129 = vpow2.f32 %v50_v12 }
  0x2e   :  { %v82_v16 = vand.u32 2147483647, %v80_v14  ;;  %131 = vpow2.f32 %v52_v13  ;;  %v83_v17 = vand.u32 2147483647, %v81_v15  ;;  %vm96_vm1 = vcmp.ge.f32.partialorder %v80_v14, 0.0  ;;  %p197_p6 = pnand %p196_p5, %p190_p2 }
  0x2f   :  { %vm97_vm3 = vcmp.ge.f32.partialorder %v81_v15, 0.0 }
  0x30   :  { %v84_v18 = vsub.f32 0.0, %v82_v16  ;;  %v85_v19 = vsub.f32 0.0, %v83_v17 }
  0x32   :  { %v86_v20 = vmul.f32 1.442695, %v84_v18  ;;  %v88_v21 = vmul.f32 1.442695, %v85_v19 }
  0x34   :  { %133 = vpow2.f32 %v86_v20 }
  0x35   :  { %135 = vpow2.f32 %v88_v21 }
  0x37   :  { %v130_v22 = vpop.eup %129 }
  0x38   :  { %v132_v23 = vpop.eup %131  ;;  %v54_v24 = vadd.f32 1.0, %v130_v22  ;;  %v57_v26 = vmul.f32 -0.5, %v130_v22  ;;  %v60_v33 = vand.u32 2147483647, %v130_v22 }
  0x39   :  { %v63_v25 = vadd.f32 1.0, %v132_v23  ;;  %v66_v28 = vmul.f32 -0.5, %v132_v23  ;;  %v69_v35 = vand.u32 2147483647, %v132_v23 }
  0x3a   :  { %137 = vlog2.f32 %v54_v24  ;;  %v58_v32 = vadd.f32 1.0, %v57_v26  ;;  %vm61_vm0 = vcmp.lt.f32.partialorder %v60_v33, 0.0004427343 }
  0x3b   :  { %139 = vlog2.f32 %v63_v25  ;;  %v67_v34 = vadd.f32 1.0, %v66_v28  ;;  %vm70_vm2 = vcmp.lt.f32.partialorder %v69_v35, 0.0004427343 }
  0x3c   :  { %v59_v38 = vmul.f32 %v130_v22, %v58_v32 }
  0x3d   :  { %v68_v42 = vmul.f32 %v132_v23, %v67_v34 }
  0x3e   :  { %v134_v27 = vpop.eup %133 }
  0x3f   :  { %v136_v29 = vpop.eup %135  ;;  %v90_v30 = vadd.f32 1.0, %v134_v27  ;;  %v98_v47 = vsel %vm96_vm1, 1.0, %v134_v27 }
  0x40   :  { %v91_v31 = vadd.f32 1.0, %v136_v29  ;;  %v99_v49 = vsel %vm97_vm3, 1.0, %v136_v29 }
  0x41   :  { %141 = vrcp.f32 %v90_v30 }
  0x42   :  { %143 = vrcp.f32 %v91_v31 }
  0x44   :  { %v138_v37 = vpop.eup %137 }
  0x45   :  { %v140_v40 = vpop.eup %139  ;;  %v56_v41 = vmul.f32 0.6931472, %v138_v37 }
  0x46   :  { %v65_v43 = vmul.f32 0.6931472, %v140_v40 }
  0x47   :  { %v62_v45 = vsel %vm61_vm0, %v59_v38, %v56_v41 }
  0x48   :  { %v71_v48 = vsel %vm70_vm2, %v68_v42, %v65_v43  ;;  %v76_v52 = vadd.f32 %v74_v44, %v62_v45 }
  0x49   :  { %v77_v54 = vadd.f32 %v75_v46, %v71_v48 }
  0x4b   :  { %v142_v50 = vpop.eup %141 }
  0x4c   :  { %v144_v51 = vpop.eup %143  ;;  %v100_v53 = vmul.f32 %v142_v50, %v98_v47 }
  0x4d   :  { %v101_v55 = vmul.f32 %v144_v51, %v99_v49 }
  0x4e   :  { %v102_v56 = vmul.f32 %v100_v53, %v100_v53 }
  0x4f   :  { %v103_v57 = vmul.f32 %v101_v55, %v101_v55 }
  0x50   :  { %v104_v58 = vmul.f32 %v102_v56, %v76_v52 }
  0x51   :  { %v105_v59 = vmul.f32 %v103_v57, %v77_v54 }
  0x53   :  { %v106_v60 = vadd.f32 %v105_v59, %v104_v58 }
  0x55   :  { %107 = vst [vmem:[#allocation7] sm:$0xff] %v106_v60 }
  0x56   :  { %200 = shalt.err (!%p197_p6)
}
  0x57   :  { %s201_s10 = scalar_lea.hbm %s275_s2, 128 }
  0x58   :  { %p202_p7 = scmp.ne.s32.totalorder %s275_s2, %s201_s10  ;;  %p205_p8 = scmp.lt.u32.totalorder %s201_s10, %s275_s2 }
  0x5a   :  { %p207_p9 = pnand %p205_p8, %p202_p7 }
  0x5c   :  { %210 = shalt.err (!%p207_p9)
}
  0x5d   :  { %117 = dma.vmem_to_hbm [thread:$0]  %s115_s6, 128, %s275_s2, [#allocation4]  }
  0x5e   :  { %215 = dma.done.wait [#allocation4], 128  }
  0x5f   :  { %216 = vsyncadd [#allocation4], 4294967168 }
  0x60   :  { %121 = vsyncpa [#allocation3], 1 }
  0x61   :  { %122 = vsyncpa [#allocation6], 1 }
  0x62   :  { %123 = vsyncpa [#allocation4], 1 }

</bundles_post_ra>
